<compile_context>
chip_gen: v7x
topology: tpu7x:2x2x1
jax: 0.10.0
libtpu: 0.0.40
codegen_flags: <defaults>
</compile_context>

<pallas_src>
import functools
import math

import jax
import jax.numpy as jnp
from jax.experimental import pallas as pl
from jax.experimental.pallas import tpu as pltpu


def _pooler_kernel(x_ref, w_ref, b_ref, o_ref, acc_ref):
    # x_ref  : (B, TK)   token-0 hidden states tile
    # w_ref  : (TN, TK)  un-transposed nn.Linear weight tile (out_rows, in_cols)
    # b_ref  : (1, TN)   bias tile
    # o_ref  : (B, TN)   pooled output tile
    # acc_ref: (B, TN)   f32 accumulator (VMEM scratch, persists across K steps)
    k = pl.program_id(1)

    @pl.when(k == 0)
    def _init():
        acc_ref[...] = jnp.zeros_like(acc_ref)

    # y_tile[b, n] += sum_k x[b, k] * W[n, k]  == (x @ W.T) tile; no transpose
    # is materialized anywhere, inputs stay native dtype, accumulate in f32.
    acc_ref[...] += jax.lax.dot_general(
        x_ref[...], w_ref[...],
        dimension_numbers=(((1,), (1,)), ((), ())),
        preferred_element_type=jnp.float32,
    )

    @pl.when(k == pl.num_programs(1) - 1)
    def _finalize():
        y = acc_ref[...] + b_ref[...].astype(jnp.float32)
        # nn.GELU() default is the exact erf-based GELU; keep it in f32
        # (erf goes to the EUP/VPU; this runs once per output tile).
        g = 0.5 * y * (1.0 + jax.lax.erf(y * (1.0 / math.sqrt(2.0))))
        o_ref[...] = g.astype(o_ref.dtype)


def _pick_tile(h, target=512):
    """Largest 128-aligned divisor of h that is <= target (or full h)."""
    if h <= target:
        return h
    for t in range(target, 127, -128):
        if h % t == 0:
            return t
    return h  # fall back to the full (untiled) dimension


def context_pooler(hidden_states, weight, bias, pooler_dropout=0.0,
                   tn=None, tk=None):
    """hidden_states: (B, S, H); weight: (H, H) nn.Linear layout; bias: (H,)."""
    # TODO(synk): training-time StableDropout (p > 0) not implemented; this is
    # the inference / p=0 forward path only.
    if pooler_dropout != 0.0:
        raise NotImplementedError("context_pooler only supports pooler_dropout=0.0")

    B, S, H = hidden_states.shape
    assert weight.shape == (H, H) and bias.shape == (H,)

    tn = tn if tn is not None else _pick_tile(H)  # output-column tile
    tk = tk if tk is not None else _pick_tile(H)  # contraction tile
    assert H % tn == 0 and H % tk == 0, "tile sizes must divide hidden size"
    grid = (H // tn, H // tk)  # (N parallel, K reduction — reduction last)

    # Token-0 selection: tiny (B, H) strided read, negligible vs. H*H weight.
    x0 = hidden_states[:, 0, :]
    bias2d = bias.reshape(1, H)

    return pl.pallas_call(
        _pooler_kernel,
        out_shape=jax.ShapeDtypeStruct((B, H), hidden_states.dtype),
        grid_spec=pltpu.PrefetchScalarGridSpec(
            num_scalar_prefetch=0,
            grid=grid,
            in_specs=[
                # token-0 rows, tiled along the contraction (K) dim only
                pl.BlockSpec((B, tk), lambda n, k: (0, k)),
                # un-transposed weight, tiled (out_rows=N, in_cols=K)
                pl.BlockSpec((tn, tk), lambda n, k: (n, k)),
                # bias tile
                pl.BlockSpec((1, tn), lambda n, k: (0, n)),
            ],
            out_specs=pl.BlockSpec((B, tn), lambda n, k: (0, n)),
            scratch_shapes=[pltpu.VMEM((B, tn), jnp.float32)],
        ),
        compiler_params=pltpu.CompilerParams(
            dimension_semantics=("parallel", "arbitrary"),
        ),
    )(x0, weight, bias2d)


if __name__ == "__main__":
    # Small deterministic example; tn=tk=128 forces a real (2, 2) grid so the
    # accumulator init/finalize and K-pipelining paths are exercised.
    B, S, H = 2, 8, 256
    key = jax.random.PRNGKey(0)
    k_x, k_w, k_b = jax.random.split(key, 3)

    hidden_states = jax.random.normal(k_x, (B, S, H), dtype=jnp.float32)
    weight = jax.random.normal(k_w, (H, H), dtype=jnp.float32) * 0.02  # nn.Linear (out, in)
    bias = jax.random.normal(k_b, (H,), dtype=jnp.float32) * 0.02

    run = functools.partial(context_pooler, pooler_dropout=0.0, tn=128, tk=128)
    out = run(hidden_states, weight, bias)
    out = jax.block_until_ready(out)

    # Pure-JAX reference of the same math (high-precision matmul reference).
    x0_ref = hidden_states[:, 0, :]
    ref = jax.nn.gelu(
        jnp.dot(x0_ref, weight.T, precision=jax.lax.Precision.HIGHEST) + bias,
        approximate=False,
    )
    assert out.shape == (B, H)
    assert jnp.allclose(out, ref, atol=1e-3, rtol=1e-3), float(jnp.max(jnp.abs(out - ref)))

    print("KERNEL_OK")
</pallas_src>

<mosaic_0001>
module attributes {stable_mosaic.version = 11 : i64} {
  func.func @_pooler_kernel(%arg0: i32, %arg1: i32, %arg2: memref<2x128xf32, #tpu.memory_space<vmem>>, %arg3: memref<128x128xf32, #tpu.memory_space<vmem>>, %arg4: memref<1x128xf32, #tpu.memory_space<vmem>>, %arg5: memref<2x128xf32, #tpu.memory_space<vmem>>, %arg6: memref<2x128xf32, #tpu.memory_space<vmem>>) attributes {dimension_semantics = [#tpu.dimension_semantics<parallel>, #tpu.dimension_semantics<arbitrary>], iteration_bounds = array<i64: 2, 2>, scalar_prefetch = 0 : i64, scratch_operands = 1 : i64, tpu.core_type = #tpu.core_type<tc>, window_params = [{transform_indices = @transform_0, window_bounds = array<i64: 2, 128>}, {transform_indices = @transform_1, window_bounds = array<i64: 128, 128>}, {transform_indices = @transform_2, window_bounds = array<i64: 1, 128>}, {transform_indices = @transform_3, window_bounds = array<i64: 2, 128>}]} {
    %c0_i32 = arith.constant 0 : i32
    %0 = arith.cmpi eq, %arg1, %c0_i32 : i32
    %1 = arith.extui %0 : i1 to i32
    %c0_i32_0 = arith.constant 0 : i32
    %2 = arith.cmpi ne, %1, %c0_i32_0 : i32
    scf.if %2 {
      %cst_9 = arith.constant 0.000000e+00 : f32
      %12 = vector.broadcast %cst_9 : f32 to vector<2x128xf32>
      %c0_10 = arith.constant 0 : index
      %c0_11 = arith.constant 0 : index
      %13 = vector.load %arg6[%c0_10, %c0_11] : memref<2x128xf32, #tpu.memory_space<vmem>>, vector<2x128xf32>
      tpu.vector_store %arg6[%c0_10, %c0_11], %12 {strides = array<i32>} : memref<2x128xf32, #tpu.memory_space<vmem>>, vector<2x128xf32>,
    } else {
    }
    %c0 = arith.constant 0 : index
    %c0_1 = arith.constant 0 : index
    %3 = vector.load %arg6[%c0, %c0_1] : memref<2x128xf32, #tpu.memory_space<vmem>>, vector<2x128xf32>
    %c0_2 = arith.constant 0 : index
    %c0_3 = arith.constant 0 : index
    %4 = vector.load %arg2[%c0_2, %c0_3] : memref<2x128xf32, #tpu.memory_space<vmem>>, vector<2x128xf32>
    %c0_4 = arith.constant 0 : index
    %c0_5 = arith.constant 0 : index
    %5 = vector.load %arg3[%c0_4, %c0_5] : memref<128x128xf32, #tpu.memory_space<vmem>>, vector<128x128xf32>
    %cst = arith.constant dense<0.000000e+00> : vector<2x128xf32>
    %6 = tpu.matmul %4, %5, %cst {dimension_numbers = #tpu.dot_dimension_numbers<[1], [1], [0], [0], [0, 0, 1, 0], [], []>} : vector<2x128xf32>, vector<128x128xf32>, vector<2x128xf32> -> vector<2x128xf32>
    %7 = arith.addf %3, %6 : vector<2x128xf32>
    %c0_6 = arith.constant 0 : index
    %c0_7 = arith.constant 0 : index
    %8 = vector.load %arg6[%c0_6, %c0_7] : memref<2x128xf32, #tpu.memory_space<vmem>>, vector<2x128xf32>
    tpu.vector_store %arg6[%c0_6, %c0_7], %7 {strides = array<i32>} : memref<2x128xf32, #tpu.memory_space<vmem>>, vector<2x128xf32>,
    %c1_i32 = arith.constant 1 : i32
    %9 = arith.cmpi eq, %arg1, %c1_i32 : i32
    %10 = arith.extui %9 : i1 to i32
    %c0_i32_8 = arith.constant 0 : i32
    %11 = arith.cmpi ne, %10, %c0_i32_8 : i32
    scf.if %11 {
      %c0_9 = arith.constant 0 : index
      %c0_10 = arith.constant 0 : index
      %12 = vector.load %arg6[%c0_9, %c0_10] : memref<2x128xf32, #tpu.memory_space<vmem>>, vector<2x128xf32>
      %c0_11 = arith.constant 0 : index
      %c0_12 = arith.constant 0 : index
      %13 = vector.load %arg4[%c0_11, %c0_12] : memref<1x128xf32, #tpu.memory_space<vmem>>, vector<1x128xf32>
      %14 = vector.broadcast %13 : vector<1x128xf32> to vector<2x128xf32>
      %15 = arith.addf %12, %14 : vector<2x128xf32>
      %cst_13 = arith.constant 5.000000e-01 : f32
      %16 = vector.broadcast %cst_13 : f32 to vector<2x128xf32>
      %17 = arith.mulf %16, %15 : vector<2x128xf32>
      %cst_14 = arith.constant 0.707106769 : f32
      %18 = vector.broadcast %cst_14 : f32 to vector<2x128xf32>
      %19 = arith.mulf %15, %18 : vector<2x128xf32>
      %20 = math.erf %19 : vector<2x128xf32>
      %cst_15 = arith.constant 1.000000e+00 : f32
      %21 = vector.broadcast %cst_15 : f32 to vector<2x128xf32>
      %22 = arith.addf %21, %20 : vector<2x128xf32>
      %23 = arith.mulf %17, %22 : vector<2x128xf32>
      %c0_16 = arith.constant 0 : index
      %c0_17 = arith.constant 0 : index
      %24 = vector.load %arg5[%c0_16, %c0_17] : memref<2x128xf32, #tpu.memory_space<vmem>>, vector<2x128xf32>
      tpu.vector_store %arg5[%c0_16, %c0_17], %23 {strides = array<i32>} : memref<2x128xf32, #tpu.memory_space<vmem>>, vector<2x128xf32>,
    } else {
    }
    return
  }
  func.func @transform_0(%arg0: i32, %arg1: i32) -> (i32, i32) {
    %c0_i32 = arith.constant 0 : i32
    %c0_i32_0 = arith.constant 0 : i32
    return %c0_i32, %arg1 : i32, i32
  }
  func.func @transform_1(%arg0: i32, %arg1: i32) -> (i32, i32) {
    %c0_i32 = arith.constant 0 : i32
    return %arg0, %arg1 : i32, i32
  }
  func.func @transform_2(%arg0: i32, %arg1: i32) -> (i32, i32) {
    %c0_i32 = arith.constant 0 : i32
    %c0_i32_0 = arith.constant 0 : i32
    return %c0_i32, %arg0 : i32, i32
  }
  func.func @transform_3(%arg0: i32, %arg1: i32) -> (i32, i32) {
    %c0_i32 = arith.constant 0 : i32
    %c0_i32_0 = arith.constant 0 : i32
    return %c0_i32, %arg0 : i32, i32
  }
}

</mosaic_0001>

<bundles_post_ra>
// kernel: tpu_custom_call.1
= control target key start
LH: loop header
LB: loop body
LE: loop exit
PB: predicated region body
PF: predicated region fallthrough
CT: control target
= control target key end

     0   :  { %8 = vsyncpa [#allocation4], 0  ;;  %s1358_s0 = inlined_call_operand.hbm [shape: f32[2,256], index: 0, kind: input, shape index: {}]   ;;  %s1359_s1 = inlined_call_operand.hbm [shape: f32[256,256], index: 1, kind: input, shape index: {}]   ;;  %s1360_s2 = inlined_call_operand.vmem [shape: f32[1,256], index: 2, kind: input, shape index: {}]   ;;  %s1361_s3 = inlined_call_operand.hbm [shape: f32[2,256], index: 3, kind: output, shape index: {}]  }
   0x1   :  { %10 = vsyncpa [#allocation4 + $0x1], 0 }
   0x2   :  { %11 = vsyncpa [#allocation7], 0 }
   0x3   :  { %13 = vsyncpa [#allocation7 + $0x1], 0 }
   0x4   :  { %14 = vsyncpa [#allocation5], 0 }
   0x5   :  { %16 = vsyncpa [#allocation5 + $0x1], 0  ;;  %s980_s12 = smov 0   ;;  %s982_s13 = smov 0  }
   0x6   :  { %s984_s14 = smov 0   ;;  %s986_s15 = smov 0  }
   0x7   :  { %s988_s16 = smov 0   ;;  %s990_s17 = smov 0  }
   0x8   :  { %s992_s18 = smov 0   ;;  %s994_s19 = smov 0  }
   0x9   :  { %s996_s20 = smov 0   ;;  %s998_s21 = smov 0  }
   0xa   :  { %s1000_s22 = smov 0   ;;  %s1002_s23 = smov 0  }
   0xb   :  { %s1004_s24 = smov 0   ;;  %s1006_s25 = smov 0  }
   0xc LB: > { %1370 = sst [smem:[#allocation12_spill]] %s904_s14  ;;  %s500_s26 = sadd.s32 4294967295, %s948_s25   ;;  %s948_s25 = sphi %s1006_s25, %s22_s25   ;;  %s944_s24 = sphi %s1004_s24, %s1413_s24   ;;  %s940_s23 = sphi %s1002_s23, %s1412_s23   ;;  %s936_s22 = sphi %s1000_s22, %s1399_s22   ;;  %s932_s21 = sphi %s998_s21, %s1411_s21   ;;  %s928_s20 = sphi %s996_s20, %s1410_s20   ;;  %s924_s19 = sphi %s994_s19, %s1409_s19   ;;  %s920_s18 = sphi %s992_s18, %s1408_s18   ;;  %s916_s17 = sphi %s990_s17, %s1407_s17   ;;  %s912_s16 = sphi %s988_s16, %s1406_s16   ;;  %s908_s15 = sphi %s986_s15, %s1405_s15   ;;  %s904_s14 = sphi %s984_s14, %s1395_s14   ;;  %s900_s13 = sphi %s982_s13, %s1404_s13   ;;  %s896_s12 = sphi %s980_s12, %s1403_s12  }
   0xd   : > { %1371 = sst [smem:[#allocation13_spill]] %s928_s20  ;;  %s31_s28 = sadd.s32 1, %s940_s23 }
   0xe   : > { %1372 = sst [smem:[#allocation14_spill]] %s944_s24  ;;  %s34_s29 = sadd.s32 1, %s944_s24 }
   0xf   : > { %p32_p0 = scmp.ge.s32.totalorder %s31_s28, 2  ;;  %s41_s30 = sadd.s32 1, %s928_s20 }
  0x10   : > { %p48_p1 = scmp.ne.s32.totalorder %s928_s20, %s924_s19  ;;  %p49_p2 = scmp.eq.s32.totalorder %s948_s25, 0 }
  0x11   : > { %s1415_s28 = smov (%p32_p0, %s31_s28), 0  ;;  %s1417_s29 = smov (!%p32_p0, %s34_s29), %s944_s24 }
  0x12   : > { %1373 = sst [smem:[#allocation15_spill]] %s1415_s28  ;;  %s38_s4 = ssub.s32 %s940_s23, %s1415_s28 }
  0x13   : > { %p1063_p3 = por %p49_p2, %p48_p1  ;;  %p36_p4 = scmp.ge.s32.totalorder %s1417_s29, 2 }
  0x14   : > { %p39_p5 = scmp.eq.s32.totalorder %s38_s4, 0  ;;  %p54_p6 = scmp.ne.s32.totalorder %s924_s19, %s920_s18 }
  0x15   : > { %p1070_p7 = scmp.eq.s32.totalorder %s500_s26, 0  ;;  %s1419_s29 = smov (%p36_p4, %s1417_s29), 0 }
  0x16   : > { %1376 = sst [smem:[#allocation16_spill]] %s1419_s29  ;;  %s64_s9 = ssub.s32 %s944_s24, %s1419_s29 }
  0x17   : > { %s1077_s7 = scalar_select %p39_p5, %s928_s20, %s41_s30  }
  0x18   : > { %p1081_p8 = por %p1070_p7, %p54_p6  ;;  %s66_s10 = sor.u32 %s64_s9, %s38_s4 }
  0x19   : > { %1377 = sst [smem:[#allocation17_spill]] %s1077_s7  ;;  %s69_s11 = sadd.s32 1, %s916_s17 }
  0x1a   : > { %s1378_s8 = scalar_select %p1081_p8, 1, 0 }
  0x1b   : > { %p67_p9 = scmp.eq.s32.totalorder %s66_s10, 0  ;;  %p76_p10 = scmp.ne.s32.totalorder %s916_s17, %s912_s16 }
  0x1c   : > { %p82_p11 = scmp.ne.s32.totalorder %s912_s16, %s908_s15  ;;  %p119_p12 = scmp.eq.s32.totalorder %s64_s9, 0 }
  0x1d   : > { %s1093_s18 = scalar_select %p67_p9, %s916_s17, %s69_s11  }
  0x1e   : > { %p1097_p13 = por %p76_p10, %p49_p2  ;;  %p1103_p0 = por %p82_p11, %p1070_p7 }
  0x1f   : > { %1379 = sst [smem:[#allocation18_spill]] %s1093_s18  ;;  %s121_s4 = sadd.s32 1, %s904_s14 }
  0x20   : > { %s1381_s27 = scalar_select %p1103_p0, 1, 0 }
  0x21   : > { %p131_p1 = scmp.ne.s32.totalorder %s904_s14, %s900_s13  ;;  %p132_p4 = scmp.eq.s32.totalorder %s500_s26, 3 }
  0x22   : > { %s1111_s10 = scalar_select %p119_p12, %s904_s14, %s121_s4  }
  0x23   : > { %p137_p5 = scmp.ne.s32.totalorder %s900_s13, %s896_s12  ;;  %s1383_s15 = sadd.s32 4294967294, %s948_s25  }
  0x24   : > { %1382 = sst [smem:[#allocation19_spill]] %s1111_s10  ;;  %p138_p2 = scmp.eq.s32.totalorder %s1383_s15, 3 }
  0x25   : > { %p1119_p6 = por %p132_p4, %p131_p1  ;;  %p615_p7 = scmp.lt.s32.totalorder %s948_s25, 4 }
  0x26   : > { %p1124_p9 = por %p138_p2, %p137_p5  ;;  %s158_s11 = sand.u32 1, %s928_s20  }
  0x27   : > { %s1384_s9 = scalar_select %p1119_p6, 1, 0 }
  0x28   : > { %s1385_s6 = scalar_select %p1124_p9, 1, 0 }
  0x29   : > { %s504_s29 = sshll.u32 %s158_s11, 1  ;;  %s505_s4 = sshll.u32 %s940_s23, 5 }
  0x2a   : > { %s1133_s26 = scalar_lea.hbm %s1358_s0, %s505_s4  ;;  %s162_s15 = scalar_lea.vmem [#allocation3], %s504_s29 }
  0x2b   : > { %s169_s18 = sshll.u32 %s162_s15, 4  ;;  %p1139_p10 = pnand %p615_p7, %p1063_p3  ;;  %s1135_s18 = int_to_ptr.vmem [resolvable:$true] %s169_s18 }
  0x2c   : > { %s521_s20 = sshll.u32 %s944_s24, 5  ;;  %p1146_p11 = pnand %p615_p7, %p1097_p13 }
  0x2d   : > { %s1151_s7 = sadd.s32 %s940_s23, %s521_s20  ;;  %s159_s29 = scalar_lea.sflag [#allocation4], %s158_s11 }
  0x2e   : > { %s738_s4 = scalar_lea.hbm %s1133_s26, 32  ;;  %p740_p1 = pneg %p1139_p10 }
  0x2f   : > { %p739_p12 = scmp.ne.s32.totalorder %s1133_s26, %s738_s4  ;;  %s743_s24 = scalar_lea.hbm %s1358_s0, 64 }
  0x30   : > { %p744_p13 = scmp.lt.u32.totalorder %s1133_s26, %s1358_s0  ;;  %p745_p5 = scmp.lt.u32.totalorder %s743_s24, %s738_s4 }
  0x31   : > { %p741_p3 = pnand %p740_p1, %p739_p12  ;;  %p747_p7 = scmp.lt.u32.totalorder %s738_s4, %s1133_s26 }
  0x32   : > { %p746_p2 = por %p745_p5, %p744_p13 }
  0x33   : > { %p742_p4 = pneg %p741_p3 }
  0x34   : > { %p748_p9 = por %p747_p7, %p746_p2 }
  0x36   : > { %p749_p6 = pnand %p748_p9, %p742_p4 }
  0x38   : > { %752 = shalt.err (!%p749_p6)
}
  0x39   : > { %s753_s20 = scalar_lea.vmem %s1135_s18, 32  ;;  %s950_s11 = smov [#allocation3]  }
  0x3a   : > { %p754_p12 = scmp.ne.s32.totalorder %s1135_s18, %s753_s20  ;;  %s758_s5 = sshll.u32 %s950_s11, 4  ;;  %s759_s5 = int_to_ptr.vmem [resolvable:$false] %s758_s5 }
  0x3b   : > { %s760_s14 = scalar_lea.vmem %s759_s5, 64  ;;  %p761_p8 = scmp.lt.s32.totalorder %s1135_s18, %s759_s5 }
  0x3c   : > { %p756_p3 = pnand %p754_p12, %p740_p1  ;;  %p762_p13 = scmp.lt.s32.totalorder %s760_s14, %s753_s20 }
  0x3e   : > { %p757_p0 = pneg %p756_p3  ;;  %p763_p5 = por %p762_p13, %p761_p8 }
  0x40   : > { %p764_p2 = pnand %p763_p5, %p757_p0 }
  0x42   : > { %767 = shalt.err (!%p764_p2)
}
  0x43   : > { %607 = dma.hbm_to_vmem [thread:$0]  (!%p1139_p10), %s1133_s26, 32, %s1135_s18, %s159_s29  }
  0x44   : > { %p510_p6 = scmp.ge.s32.totalorder %s948_s25, 1  ;;  %p203_p9 = scmp.lt.s32.totalorder %s948_s25, 5 }
  0x45   : > { %s176_s24 = sand.u32 1, %s916_s17   ;;  %s509_s30 = sshll.u32 %s1151_s7, 7 }
  0x46   : > { %s506_s4 = sshll.u32 %s176_s24, 7  ;;  %p1181_p1 = pnand %p510_p6, %p203_p9 }
  0x47   : > { %s180_s20 = scalar_lea.vmem [#allocation6], %s506_s4  ;;  %s1189_s14 = scalar_lea.hbm %s1359_s1, %s509_s30 }
  0x48   : > { %s189_s10 = sshll.u32 %s180_s20, 4  ;;  %s1193_s18 = scalar_lea.sflag [#allocation7], %s176_s24  ;;  %s1191_s10 = int_to_ptr.vmem [resolvable:$true] %s189_s10 }
  0x49   : > { %s768_s26 = scalar_lea.hbm %s1189_s14, 2048  ;;  %p770_p0 = pneg %p1146_p11 }
  0x4a   : > { %p769_p8 = scmp.ne.s32.totalorder %s1189_s14, %s768_s26  ;;  %s773_s4 = scalar_lea.hbm %s1359_s1, 8192 }
  0x4b   : > { %p774_p7 = scmp.lt.u32.totalorder %s1189_s14, %s1359_s1  ;;  %p775_p12 = scmp.lt.u32.totalorder %s773_s4, %s768_s26 }
  0x4c   : > { %p771_p10 = pnand %p770_p0, %p769_p8  ;;  %p777_p13 = scmp.lt.u32.totalorder %s768_s26, %s1189_s14 }
  0x4d   : > { %p776_p3 = por %p775_p12, %p774_p7 }
  0x4e   : > { %p772_p4 = pneg %p771_p10 }
  0x4f   : > { %p778_p5 = por %p777_p13, %p776_p3 }
  0x51   : > { %p779_p2 = pnand %p778_p5, %p772_p4 }
  0x53   : > { %782 = shalt.err (!%p779_p2)
}
  0x54   : > { %s783_s24 = scalar_lea.vmem %s1191_s10, 2048  ;;  %s951_s11 = smov [#allocation6]  }
  0x55   : > { %p784_p6 = scmp.ne.s32.totalorder %s1191_s10, %s783_s24  ;;  %s788_s5 = sshll.u32 %s951_s11, 4  ;;  %s789_s5 = int_to_ptr.vmem [resolvable:$false] %s788_s5 }
  0x56   : > { %s790_s7 = scalar_lea.vmem %s789_s5, 4096  ;;  %p791_p10 = scmp.lt.s32.totalorder %s1191_s10, %s789_s5 }
  0x57   : > { %p786_p9 = pnand %p784_p6, %p770_p0  ;;  %p792_p7 = scmp.lt.s32.totalorder %s790_s7, %s783_s24 }
  0x59   : > { %p787_p8 = pneg %p786_p9  ;;  %p793_p12 = por %p792_p7, %p791_p10 }
  0x5b   : > { %p794_p3 = pnand %p793_p12, %p787_p8 }
  0x5d   : > { %797 = shalt.err (!%p794_p3)
}
  0x5e   : > { %s952_s26 = smov 256   ;;  %s953_s29 = smov 128  }
  0x5f   : > { %s954_s4 = smov 8   ;;  %207 = sbr.rel (%p1181_p1) target bundleno = 450 (0x1c2), region = 32 }
  0x60   : > { %610 = dma.hbm_to_vmem [thread:$0]  (!%p1146_p11), %s1189_s14, 2048, %s1191_s10, %s1193_s18, %s952_s26, %s953_s29, %s954_s4  }
  0x61   : > { %s209_s30 = sand.u32 (!%p1181_p1), 1, %s924_s19   ;;  %p1389_p0 = scmp.ne.s32.totalorder (!%p1181_p1), %s1378_s8, 0 }
  0x62   : > { %s1224_s20 = sshll.u32 (!%p1181_p1), %s209_s30, 1  ;;  %s210_s24 = scalar_lea.sflag (!%p1181_p1), [#allocation4], %s209_s30 }
  0x63   : > { %s213_s11 = scalar_lea.vmem (!%p1181_p1), [#allocation3], %s1224_s20 }
  0x66   : > { %883 = dma.done.wait (%p1389_p0), %s210_s24, 32  }
  0x67   : > { %885 = vsyncadd (%p1389_p0), %s210_s24, 4294967264  ;;  %s218_s28 = sand.u32 1, %s912_s16   ;;  %p1390_p11 = scmp.ne.s32.totalorder %s1381_s27, 0 }
  0x68   : > { %s512_s10 = sshll.u32 %s218_s28, 7  ;;  %s219_s14 = scalar_lea.sflag [#allocation7], %s218_s28 }
  0x69   : > { %s1232_s15 = scalar_lea.vmem [#allocation6], %s512_s10 }
  0x6a   : > { %887 = dma.done.wait (%p1390_p11), %s219_s14, 2048  }
  0x6b   : > { %889 = vsyncadd (%p1390_p11), %s219_s14, 4294965248  ;;  %s250_s18 = sand.u32 1, %s900_s13   ;;  %p254_p1 = scmp.lt.s32.totalorder %s936_s22, 1 }
  0x6c   : > { %s1242_s8 = sshll.u32 %s250_s18, 1  ;;  %p514_p4 = scmp.ne.s32.totalorder %s932_s21, 0 }
  0x6d   : > { %s1245_s5 = scalar_select %p254_p1, %s936_s22, 1 }
  0x6e   : > { %s252_s4 = scalar_lea.vmem [#allocation8], %s1242_s8  ;;  %260 = sbr.rel (%p514_p4) target bundleno = 117 (0x75), region = 44  ;;  %v955_v0 = vmov (!%p514_p4), 0.0  }
  0x6f   : > { %s256_s29 = scalar_lea.vmem %s1360_s2, %s1245_s5  ;;  %261 = vst [vmem:[#allocation2] sm:$0x3] (!%p514_p4), %v955_v0 }
  0x75 PF: > { %v264_v1 = vld [vmem:[%s1232_s15] sm:$0xff]  ;;  %v265_v2 = vld [vmem:[%s1232_s15 + $0x8] sm:$0xff]  ;;  %v956_v3 = vmov 0.0|0.0   ;;  %vm957_vm0 = vmmov 0   ;;  %v958_v5 = vmov 0.0   ;;  %v266_v6 = vld [vmem:[%s1232_s15 + $0x10] sm:$0xff] }
  0x76   : > { %574 = vmatprep.subr.bf16.mxu0 %v956_v3  ;;  %v575_v4 = vpack.c.bf16 %v265_v2, %v264_v1  ;;  %571 = vmatprep.mubr.msk.f32.mxu0 %vm957_vm0, %v958_v5  ;;  %v267_v7 = vld [vmem:[%s1232_s15 + $0x18] sm:$0xff]  ;;  %v268_v9 = vld [vmem:[%s1232_s15 + $0x20] sm:$0xff]  ;;  %v269_v10 = vld [vmem:[%s1232_s15 + $0x28] sm:$0xff]  ;;  %p515_p13 = scmp.ne.s32.totalorder %s932_s21, 1 }
  0x77   : > { %v578_v8 = vpack.c.bf16 %v267_v7, %v266_v6  ;;  %v581_v11 = vpack.c.bf16 %v269_v10, %v268_v9  ;;  %v270_v12 = vld [vmem:[%s1232_s15 + $0x30] sm:$0xff]  ;;  %v271_v13 = vld [vmem:[%s1232_s15 + $0x38] sm:$0xff]  ;;  %v272_v15 = vld [vmem:[%s1232_s15 + $0x40] sm:$0xff] }
  0x78   : > { %576 = vmatpush3.bf16.xpose.msra.mxu0 %v575_v4  ;;  %v584_v14 = vpack.c.bf16 %v271_v13, %v270_v12  ;;  %v273_v16 = vld [vmem:[%s1232_s15 + $0x48] sm:$0xff]  ;;  %v274_v18 = vld [vmem:[%s1232_s15 + $0x50] sm:$0xff]  ;;  %v275_v19 = vld [vmem:[%s1232_s15 + $0x58] sm:$0xff] }
  0x79   : > { %577 = vmatprep.subr.bf16.mxu0 %v956_v3  ;;  %v587_v17 = vpack.c.bf16 %v273_v16, %v272_v15  ;;  %v590_v20 = vpack.c.bf16 %v275_v19, %v274_v18  ;;  %v276_v21 = vld [vmem:[%s1232_s15 + $0x60] sm:$0xff]  ;;  %v277_v22 = vld [vmem:[%s1232_s15 + $0x68] sm:$0xff]  ;;  %v278_v24 = vld [vmem:[%s1232_s15 + $0x70] sm:$0xff] }
  0x7a   : > { %v593_v23 = vpack.c.bf16 %v277_v22, %v276_v21  ;;  %v279_v25 = vld [vmem:[%s1232_s15 + $0x78] sm:$0xff] }
  0x7b   : > { %v596_v26 = vpack.c.bf16 %v279_v25, %v278_v24  ;;  %v263_v27 = vld [vmem:[%s213_s11] sm:$0x3]  ;;  %v262_v28 = vld [vmem:[#allocation2] sm:$0x3] }
  0x7c   : > { %v516_v33 = vld [vmem:[%s256_s29] ss:$0 sm:$0xff] (!%p515_p13) }
  0x80   : > { %579 = vmatpush3.bf16.xpose.msra.mxu0 %v578_v8 }
  0x81   : > { %580 = vmatprep.subr.bf16.mxu0 %v956_v3 }
  0x88   : > { %582 = vmatpush3.bf16.xpose.msra.mxu0 %v581_v11 }
  0x89   : > { %583 = vmatprep.subr.bf16.mxu0 %v956_v3 }
  0x90   : > { %585 = vmatpush3.bf16.xpose.msra.mxu0 %v584_v14 }
  0x91   : > { %586 = vmatprep.subr.bf16.mxu0 %v956_v3 }
  0x98   : > { %588 = vmatpush3.bf16.xpose.msra.mxu0 %v587_v17 }
  0x99   : > { %589 = vmatprep.subr.bf16.mxu0 %v956_v3 }
  0xa0   : > { %591 = vmatpush3.bf16.xpose.msra.mxu0 %v590_v20 }
  0xa1   : > { %592 = vmatprep.subr.bf16.mxu0 %v956_v3 }
  0xa8   : > { %594 = vmatpush3.bf16.xpose.msra.mxu0 %v593_v23 }
  0xa9   : > { %595 = vmatprep.subr.bf16.mxu0 %v956_v3 }
  0xb0   : > { %597 = vmatpush3.bf16.xpose.msra.mxu0 %v596_v26 }
  0xb7   : > { %572 = vmatmul.mubr.f32.vlgmr.msra.gmra.mrb[0].mxu0 %v263_v27 }
 0x187   : > { %355 = sbr.rel (%p515_p13) target bundleno = 425 (0x1a9), region = 48 }
 0x18a   : > { %v346_v29 = vpop.f32.mrb[0].mxu0 }
 0x18b   : > { %v350_v30 = vadd.f32 %v346_v29, %v262_v28  ;;  %v573_v31 = vpop.f32.mrb[1].mxu0 }
 0x18d   : > { %351 = vst [vmem:[#allocation2] sm:$0x3] %v350_v30 }
 0x194   : > { %v356_v32 = vld [vmem:[#allocation2] sm:$0x3] }
 0x195   : > { %v364_v34 = vadd.f32 %v516_v33, %v356_v32 }
 0x197   : > { %v366_v35 = vmul.f32 0.70710677, %v364_v34  ;;  %v365_v36 = vmul.f32 0.5, %v364_v34 }
 0x199   : > { %736 = verf.f32 %v366_v35 }
 0x1a3   : > { %v737_v37 = vpop.eup %736 }
 0x1a4   : > { %v368_v38 = vadd.f32 1.0, %v737_v37 }
 0x1a6   : > { %v369_v39 = vmul.f32 %v368_v38, %v365_v36 }
 0x1a8   : > { %370 = vst [vmem:[%s252_s4] sm:$0x3] %v369_v39 }
 0x1a9 PF: > { %s518_s21 = sshll.u32 %s936_s22, 5  ;;  %s385_s28 = sshll.u32 %s252_s4, 4  ;;  %s386_s28 = int_to_ptr.vmem [resolvable:$true] %s385_s28 }
 0x1aa   : > { %s1283_s11 = scalar_lea.hbm %s1361_s3, %s518_s21  ;;  %s372_s10 = scalar_lea.sflag [#allocation5], %s250_s18 }
 0x1ab   : > { %s798_s14 = scalar_lea.vmem %s386_s28, 32  ;;  %p1391_p2 = scmp.ne.s32.totalorder %s1384_s9, 0 }
 0x1ac   : > { %p799_p5 = scmp.ne.s32.totalorder %s386_s28, %s798_s14  ;;  %s959_s15 = smov [#allocation8]  }
 0x1ad   : > { %s802_s5 = sshll.u32 %s959_s15, 4  ;;  %s803_s5 = int_to_ptr.vmem [resolvable:$false] %s802_s5 }
 0x1ae   : > { %p800_p6 = pnand %p799_p5, %p1391_p2  ;;  %s804_s7 = scalar_lea.vmem %s803_s5, 64 }
 0x1af   : > { %p805_p8 = scmp.lt.s32.totalorder %s386_s28, %s803_s5  ;;  %p806_p10 = scmp.lt.s32.totalorder %s804_s7, %s798_s14 }
 0x1b0   : > { %p801_p9 = pneg %p800_p6 }
 0x1b1   : > { %p807_p7 = por %p806_p10, %p805_p8 }
 0x1b3   : > { %p808_p12 = pnand %p807_p7, %p801_p9 }
 0x1b5   : > { %811 = shalt.err (!%p808_p12)
}
 0x1b6   : > { %s812_s22 = scalar_lea.hbm %s1283_s11, 32  ;;  %s816_s26 = scalar_lea.hbm %s1361_s3, 64 }
 0x1b7   : > { %p813_p3 = scmp.ne.s32.totalorder %s1283_s11, %s812_s22  ;;  %p817_p1 = scmp.lt.u32.totalorder %s1283_s11, %s1361_s3 }
 0x1b8   : > { %p818_p4 = scmp.lt.u32.totalorder %s816_s26, %s812_s22  ;;  %p820_p5 = scmp.lt.u32.totalorder %s812_s22, %s1283_s11 }
 0x1b9   : > { %p814_p0 = pnand %p813_p3, %p1391_p2 }
 0x1ba   : > { %p819_p13 = por %p818_p4, %p817_p1 }
 0x1bb   : > { %p815_p11 = pneg %p814_p0 }
 0x1bc   : > { %p821_p6 = por %p820_p5, %p819_p13 }
 0x1be   : > { %p822_p9 = pnand %p821_p6, %p815_p11 }
 0x1c0   : > { %825 = shalt.err (!%p822_p9)
}
 0x1c1   : > { %602 = dma.vmem_to_hbm [thread:$0]  (%p1391_p2), %s386_s28, 32, %s1283_s11, %s372_s10  }
 0x1c2 PF: > { %p616_p8 = scmp.ge.s32.totalorder %s948_s25, 2  ;;  %s397_s27 = sand.u32 1, %s896_s12  }
 0x1c3   : > { %p1392_p10 = scmp.ne.s32.totalorder %s1385_s6, 0  ;;  %s398_s30 = scalar_lea.sflag [#allocation5], %s397_s27 }
 0x1c5   : > { %p612_p7 = pnand %p616_p8, %p1392_p10 }
 0x1c7   : > { %891 = dma.done.wait (!%p612_p7), %s398_s30, 32  }
 0x1c8   : > { %893 = vsyncadd (!%p612_p7), %s398_s30, 4294967264  ;;  %s22_s25 = sadd.s32 1, %s948_s25   ;;  %s1394_s9 = sld [smem:[#allocation12_spill]] }
 0x1c9   : > { %p1311_p12 = scmp.ge.s32.totalorder %s22_s25, 6   ;;  %s1395_s14 = sld [smem:[#allocation19_spill]] }
 0x1ca   : > { %s1396_s20 = sld [smem:[#allocation18_spill]]  ;;  %s1397_s24 = sld [smem:[#allocation13_spill]] }
 0x1cb   : > { %s1398_s11 = sld [smem:[#allocation17_spill]]  ;;  %s1399_s22 = sld [smem:[#allocation14_spill]] }
 0x1cc   : > { %s1400_s6 = sld [smem:[#allocation15_spill]]  ;;  %s1401_s28 = sld [smem:[#allocation16_spill]] }
 0x1cd   : > { %s1403_s12 = smov %s900_s13  ;;  %s1405_s15 = smov %s912_s16 }
 0x1ce   : > { %s1404_s13 = smov %s1394_s9  ;;  %s1406_s16 = smov %s916_s17 }
 0x1cf   : > { %s1408_s18 = smov %s924_s19  ;;  %s1411_s21 = smov %s940_s23 }
 0x1d0   : > { %s1407_s17 = smov %s1396_s20  ;;  %s1409_s19 = smov %s1397_s24 }
 0x1d1   : > { %s1410_s20 = smov %s1398_s11  ;;  %21 = sbr.rel (!%p1311_p12) target bundleno = 12 (0xc), region = 101 }
 0x1d2   : > { %s1412_s23 = smov %s1400_s6  ;;  %s1413_s24 = smov %s1401_s28 }
 0x1d8   :  { %403 = vsyncpa [#allocation4], 1 }
 0x1d9   :  { %405 = vsyncpa [#allocation4 + $0x1], 1 }
 0x1da   :  { %406 = vsyncpa [#allocation7], 1 }
 0x1db   :  { %408 = vsyncpa [#allocation7 + $0x1], 1 }
 0x1dc   :  { %409 = vsyncpa [#allocation5], 1 }
 0x1dd   :  { %411 = vsyncpa [#allocation5 + $0x1], 1 }

</bundles_post_ra>
